<compile_context>
chip_gen: v5e
topology: v5e:2x2
jax: 0.10.0
libtpu: 0.0.40
codegen_flags: <defaults>
</compile_context>

<pallas_src>
import functools
import math

import jax
import jax.numpy as jnp
from jax import lax
from jax.experimental import pallas as pl
from jax.experimental.pallas import tpu as pltpu


# ------------------------------ Fused kernel -------------------------------- #

def _mha_kernel(xq_ref, xk_ref, xv_ref, wqkv_ref, bqkv_ref, wo_ref, bo_ref,
                o_ref, kv_ref, cat_ref, *, h, mxu_dtype, cache_kv):
    # Per grid step (b, qi):
    #   xq       : (tq, d_model)            query-activation tile
    #   xk, xv   : (S_kv, d_model)          full key/value activations, batch b
    #   wqkv     : (d_model, 3*d_model)     [Wq | Wk | Wv]  (mxu_dtype)
    #   bqkv     : (1, 3*d_model)           [bq | bk | bv]  (f32)
    #   wo, bo   : (d_model, d_model) mxu_dtype, (1, d_model) f32
    #   o        : (tq, d_model)
    #   kv_ref   : (S_kv, 2*d_model) scratch, [K_proj | V_proj] cached per batch
    #   cat_ref  : (tq, d_model) scratch, concat-heads staging for the O-proj
    d_model = xq_ref.shape[-1]
    d_k = d_model // h
    inv_sqrt_dk = 1.0 / math.sqrt(d_k)
    qi = pl.program_id(1)

    def compute_kv():
        # K/V projections (bias added in f32, stored in mxu_dtype).
        wk = wqkv_ref[:, 1 * d_model:2 * d_model]
        wv = wqkv_ref[:, 2 * d_model:3 * d_model]
        k = jnp.dot(xk_ref[...].astype(mxu_dtype), wk,
                    preferred_element_type=jnp.float32) + bqkv_ref[:, 1 * d_model:2 * d_model]
        v = jnp.dot(xv_ref[...].astype(mxu_dtype), wv,
                    preferred_element_type=jnp.float32) + bqkv_ref[:, 2 * d_model:3 * d_model]
        kv_ref[:, 0:d_model] = k.astype(kv_ref.dtype)
        kv_ref[:, d_model:2 * d_model] = v.astype(kv_ref.dtype)

    if cache_kv:
        # K/V depend only on the batch index -> compute once per batch element
        # (q-tile axis is "arbitrary", so qi == 0 runs first on this core).
        pl.when(qi == 0)(compute_kv)
    else:
        compute_kv()

    # Query projection for this tile.  Q is pre-scaled by 1/sqrt(d_k)
    # (O(tq*d_model) instead of O(tq*S_kv)).
    q = jnp.dot(xq_ref[...].astype(mxu_dtype), wqkv_ref[:, 0:d_model],
                preferred_element_type=jnp.float32) + bqkv_ref[:, 0:d_model]
    q = (q * inv_sqrt_dk).astype(mxu_dtype)

    # Per-head attention.  Heads are static lane slices (h small & static).
    # Each head's (tq, d_k) result is written straight into the concat scratch
    # so only one head's intermediates stay live at a time.
    for hd in range(h):
        sl = slice(hd * d_k, (hd + 1) * d_k)
        k_h = kv_ref[:, hd * d_k:(hd + 1) * d_k]                       # (S_kv, d_k)
        v_h = kv_ref[:, d_model + hd * d_k:d_model + (hd + 1) * d_k]   # (S_kv, d_k)

        # scores = Q_h K_h^T : contract minor dims directly (no transpose).
        scores = lax.dot_general(q[:, sl], k_h, (((1,), (1,)), ((), ())),
                                 preferred_element_type=jnp.float32)   # (tq, S_kv)

        # Numerically stable softmax; normalization is deferred to the small
        # (tq, d_k) PV result instead of the (tq, S_kv) probability matrix.
        m = jnp.max(scores, axis=-1, keepdims=True)
        p = jnp.exp(scores - m)                                        # f32 (safe on v5e too)
        denom = jnp.sum(p, axis=-1, keepdims=True)

        head = jnp.dot(p.astype(mxu_dtype), v_h,
                       preferred_element_type=jnp.float32)             # (tq, d_k)
        cat_ref[:, sl] = head * pl.reciprocal(denom, approx=True)

    # One full-K=d_model output projection over the concatenated heads.
    out = jnp.dot(cat_ref[...].astype(mxu_dtype), wo_ref[...],
                  preferred_element_type=jnp.float32) + bo_ref[...]
    o_ref[...] = out.astype(o_ref.dtype)


# ------------------------------ Module wrapper ------------------------------ #

def init_mha_params(key, d_model):
    """Deterministic init of the 4 Linear(d_model, d_model) layers.

    Weights are stored as (in_features, out_features) so the kernel computes
    y = x @ W + b (equivalent to nn.Linear with W transposed at init time).
    """
    keys = jax.random.split(key, 8)
    scale = 1.0 / math.sqrt(d_model)
    params = {}
    for i, n in enumerate(["q", "k", "v", "o"]):
        params["w" + n] = jax.random.uniform(
            keys[2 * i], (d_model, d_model), jnp.float32, -scale, scale)
        params["b" + n] = jax.random.uniform(
            keys[2 * i + 1], (d_model,), jnp.float32, -scale, scale)
    return params


def prepare_mha_params(params, mxu_dtype=jnp.bfloat16):
    """One-time parameter prep: concat QKV weights/biases, cast MXU operands.

    Hoisted out of the forward call so the (d_model, 3*d_model) concat is not
    re-materialized in HBM on every call.
    """
    d_model = params["wq"].shape[0]
    wqkv = jnp.concatenate([params["wq"], params["wk"], params["wv"]],
                           axis=1).astype(mxu_dtype)
    bqkv = jnp.concatenate([params["bq"], params["bk"], params["bv"]]
                           ).reshape(1, 3 * d_model).astype(jnp.float32)
    wo = params["wo"].astype(mxu_dtype)
    bo = params["bo"].reshape(1, d_model).astype(jnp.float32)
    return {"wqkv": wqkv, "bqkv": bqkv, "wo": wo, "bo": bo,
            "mxu_dtype": mxu_dtype}


def _pick_q_tile(S_q):
    if S_q <= 256:
        return S_q
    for t in (512, 256, 128):
        if S_q % t == 0:
            return t
    return S_q  # TODO(synk): pad ragged sequence lengths instead


def _vmem_limit_bytes(S_kv, tq, d_model, act_bytes, mxu_bytes):
    dm = d_model
    weights = (3 * dm * dm + dm * dm) * mxu_bytes + 4 * dm * 4            # wqkv + wo + biases
    acts = 2 * tq * dm * act_bytes + 2 * 2 * S_kv * dm * act_bytes        # xq dbl-buffered; xk/xv resident
    scratch = S_kv * 2 * dm * mxu_bytes + tq * dm * 4                     # KV cache + concat-heads
    scores = 2 * tq * S_kv * 4                                            # live (tq, S_kv) f32 score/prob
    outs = 2 * tq * dm * act_bytes
    est = int(1.3 * (weights + acts + scratch + scores + outs)) + (2 << 20)
    return max(min(est, 60 << 20), 16 << 20)                              # stay under v7x's 64 MiB


def multi_head_attention(query, key, value, prepared, h, mask=None,
                         cache_kv=True):
    """Forward pass equivalent to MultiHeadAttention.forward (eval, mask=None)."""
    assert mask is None, "TODO(synk): mask path not implemented"
    B, S_q, d_model = query.shape
    Bk, S_kv, dmk = key.shape
    assert value.shape == key.shape and Bk == B and dmk == d_model
    assert d_model % h == 0

    mxu_dtype = prepared["mxu_dtype"]
    tq = _pick_q_tile(S_q)
    assert S_q % tq == 0
    n_q = S_q // tq

    vmem_limit = _vmem_limit_bytes(S_kv, tq, d_model,
                                   query.dtype.itemsize,
                                   jnp.dtype(mxu_dtype).itemsize)

    kernel = functools.partial(_mha_kernel, h=h, mxu_dtype=mxu_dtype,
                               cache_kv=cache_kv)

    q_spec = pl.BlockSpec((None, tq, d_model), lambda b, qi: (b, qi, 0))
    kv_spec = pl.BlockSpec((None, S_kv, d_model), lambda b, qi: (b, 0, 0))

    return pl.pallas_call(
        kernel,
        out_shape=jax.ShapeDtypeStruct((B, S_q, d_model), query.dtype),
        grid=(B, n_q),
        in_specs=[
            q_spec, kv_spec, kv_spec,
            pl.BlockSpec((d_model, 3 * d_model), lambda b, qi: (0, 0)),
            pl.BlockSpec((1, 3 * d_model), lambda b, qi: (0, 0)),
            pl.BlockSpec((d_model, d_model), lambda b, qi: (0, 0)),
            pl.BlockSpec((1, d_model), lambda b, qi: (0, 0)),
        ],
        out_specs=q_spec,
        scratch_shapes=[
            pltpu.VMEM((S_kv, 2 * d_model), mxu_dtype),   # cached [K|V] projections
            pltpu.VMEM((tq, d_model), jnp.float32),       # concat-heads staging
        ],
        compiler_params=pltpu.CompilerParams(
            dimension_semantics=("parallel",
                                 "arbitrary" if cache_kv else "parallel"),
            vmem_limit_bytes=vmem_limit),
    )(query, key, value,
      prepared["wqkv"], prepared["bqkv"], prepared["wo"], prepared["bo"])


# ------------------------------- Reference ---------------------------------- #

def multi_head_attention_ref(query, key, value, params, h):
    B, S, d_model = query.shape
    d_k = d_model // h

    def project(x, w, b):
        y = x.reshape(B * S, d_model) @ w + b
        return y.reshape(B, S, h, d_k).transpose(0, 2, 1, 3)

    q = project(query, params["wq"], params["bq"])
    k = project(key, params["wk"], params["bk"])
    v = project(value, params["wv"], params["bv"])
    scores = jnp.einsum("bhqd,bhkd->bhqk", q, k) / math.sqrt(d_k)
    p = jax.nn.softmax(scores, axis=-1)
    x = jnp.einsum("bhqk,bhkd->bhqd", p, v)
    x = x.transpose(0, 2, 1, 3).reshape(B * S, d_model)
    return (x @ params["wo"] + params["bo"]).reshape(B, S, d_model)


# --------------------------------- Main -------------------------------------- #

if __name__ == "__main__":
    B, S, d_model, h = 2, 8, 32, 4

    root = jax.random.PRNGKey(0)
    k_params, k_q, k_k, k_v = jax.random.split(root, 4)

    params = init_mha_params(k_params, d_model)
    query = jax.random.normal(k_q, (B, S, d_model), jnp.float32)
    key_ = jax.random.normal(k_k, (B, S, d_model), jnp.float32)
    value = jax.random.normal(k_v, (B, S, d_model), jnp.float32)

    ref = multi_head_attention_ref(query, key_, value, params, h)

    # f32 MXU-operand path: tight check (tolerance loosened slightly only for
    # the EUP approximate reciprocal in the softmax normalization).
    prep_f32 = prepare_mha_params(params, mxu_dtype=jnp.float32)
    out_f32 = multi_head_attention(query, key_, value, prep_f32, h, mask=None)
    out_f32 = jax.block_until_ready(out_f32)
    assert out_f32.shape == (B, S, d_model)
    assert jnp.allclose(out_f32, ref, atol=1e-2, rtol=1e-2), "f32 path mismatch"

    # bf16 MXU-operand / f32-accumulate fast path (default): loose tolerance.
    prep_bf16 = prepare_mha_params(params, mxu_dtype=jnp.bfloat16)
    out_bf16 = multi_head_attention(query, key_, value, prep_bf16, h, mask=None)
    out_bf16 = jax.block_until_ready(out_bf16)
    assert out_bf16.shape == (B, S, d_model)
    assert jnp.allclose(out_bf16, ref, atol=1e-1, rtol=1e-1), "bf16 path mismatch"

    print("KERNEL_OK")
</pallas_src>

<mosaic_0001>
module attributes {stable_mosaic.version = 11 : i64} {
  func.func @_mha_kernel(%arg0: i32, %arg1: i32, %arg2: memref<1x8x32xf32, #tpu.memory_space<vmem>>, %arg3: memref<1x8x32xf32, #tpu.memory_space<vmem>>, %arg4: memref<1x8x32xf32, #tpu.memory_space<vmem>>, %arg5: memref<32x96xf32, #tpu.memory_space<vmem>>, %arg6: memref<1x96xf32, #tpu.memory_space<vmem>>, %arg7: memref<32x32xf32, #tpu.memory_space<vmem>>, %arg8: memref<1x32xf32, #tpu.memory_space<vmem>>, %arg9: memref<1x8x32xf32, #tpu.memory_space<vmem>>, %arg10: memref<8x64xf32, #tpu.memory_space<vmem>>, %arg11: memref<8x32xf32, #tpu.memory_space<vmem>>) attributes {dimension_semantics = [#tpu.dimension_semantics<parallel>, #tpu.dimension_semantics<arbitrary>], iteration_bounds = array<i64: 2, 1>, scalar_prefetch = 0 : i64, scratch_operands = 2 : i64, tpu.core_type = #tpu.core_type<tc>, window_params = [{transform_indices = @transform_0, window_bounds = array<i64: 1, 8, 32>}, {transform_indices = @transform_1, window_bounds = array<i64: 1, 8, 32>}, {transform_indices = @transform_2, window_bounds = array<i64: 1, 8, 32>}, {pipeline_mode = #tpu.pipeline_mode<synchronous>, transform_indices = @transform_3, window_bounds = array<i64: 32, 96>}, {pipeline_mode = #tpu.pipeline_mode<synchronous>, transform_indices = @transform_4, window_bounds = array<i64: 1, 96>}, {pipeline_mode = #tpu.pipeline_mode<synchronous>, transform_indices = @transform_5, window_bounds = array<i64: 32, 32>}, {pipeline_mode = #tpu.pipeline_mode<synchronous>, transform_indices = @transform_6, window_bounds = array<i64: 1, 32>}, {transform_indices = @transform_7, window_bounds = array<i64: 1, 8, 32>}]} {
    %c0_i32 = arith.constant 0 : i32
    %0 = arith.cmpi eq, %arg1, %c0_i32 : i32
    %1 = arith.extui %0 : i1 to i32
    %c0_i32_0 = arith.constant 0 : i32
    %2 = arith.cmpi ne, %1, %c0_i32_0 : i32
    scf.if %2 {
      %c0_51 = arith.constant 0 : index
      %c32_52 = arith.constant 32 : index
      %85 = vector.load %arg5[%c0_51, %c32_52] : memref<32x96xf32, #tpu.memory_space<vmem>>, vector<32x32xf32>
      %c0_53 = arith.constant 0 : index
      %c64 = arith.constant 64 : index
      %86 = vector.load %arg5[%c0_53, %c64] : memref<32x96xf32, #tpu.memory_space<vmem>>, vector<32x32xf32>
      %c0_54 = arith.constant 0 : index
      %c0_55 = arith.constant 0 : index
      %c0_56 = arith.constant 0 : index
      %87 = vector.load %arg3[%c0_54, %c0_55, %c0_56] : memref<1x8x32xf32, #tpu.memory_space<vmem>>, vector<1x8x32xf32>
      %88 = vector.shape_cast %87 : vector<1x8x32xf32> to vector<8x32xf32>
      %cst_57 = arith.constant dense<0.000000e+00> : vector<8x32xf32>
      %89 = tpu.matmul %88, %85, %cst_57 {dimension_numbers = #tpu.dot_dimension_numbers<[1], [0], [0], [1], [0, 0, 1, 1], [], []>} : vector<8x32xf32>, vector<32x32xf32>, vector<8x32xf32> -> vector<8x32xf32>
      %c0_58 = arith.constant 0 : index
      %c32_59 = arith.constant 32 : index
      %90 = vector.load %arg6[%c0_58, %c32_59] : memref<1x96xf32, #tpu.memory_space<vmem>>, vector<1x32xf32>
      %91 = vector.broadcast %90 : vector<1x32xf32> to vector<8x32xf32>
      %92 = arith.addf %89, %91 : vector<8x32xf32>
      %c0_60 = arith.constant 0 : index
      %c0_61 = arith.constant 0 : index
      %c0_62 = arith.constant 0 : index
      %93 = vector.load %arg4[%c0_60, %c0_61, %c0_62] : memref<1x8x32xf32, #tpu.memory_space<vmem>>, vector<1x8x32xf32>
      %94 = vector.shape_cast %93 : vector<1x8x32xf32> to vector<8x32xf32>
      %cst_63 = arith.constant dense<0.000000e+00> : vector<8x32xf32>
      %95 = tpu.matmul %94, %86, %cst_63 {dimension_numbers = #tpu.dot_dimension_numbers<[1], [0], [0], [1], [0, 0, 1, 1], [], []>} : vector<8x32xf32>, vector<32x32xf32>, vector<8x32xf32> -> vector<8x32xf32>
      %c0_64 = arith.constant 0 : index
      %c64_65 = arith.constant 64 : index
      %96 = vector.load %arg6[%c0_64, %c64_65] : memref<1x96xf32, #tpu.memory_space<vmem>>, vector<1x32xf32>
      %97 = vector.broadcast %96 : vector<1x32xf32> to vector<8x32xf32>
      %98 = arith.addf %95, %97 : vector<8x32xf32>
      %c0_66 = arith.constant 0 : index
      %c0_67 = arith.constant 0 : index
      %99 = vector.load %arg10[%c0_66, %c0_67] : memref<8x64xf32, #tpu.memory_space<vmem>>, vector<8x32xf32>
      tpu.vector_store %arg10[%c0_66, %c0_67], %92 {strides = array<i32>} : memref<8x64xf32, #tpu.memory_space<vmem>>, vector<8x32xf32>,
      %c0_68 = arith.constant 0 : index
      %c32_69 = arith.constant 32 : index
      %100 = vector.load %arg10[%c0_68, %c32_69] : memref<8x64xf32, #tpu.memory_space<vmem>>, vector<8x32xf32>
      tpu.vector_store %arg10[%c0_68, %c32_69], %98 {strides = array<i32>} : memref<8x64xf32, #tpu.memory_space<vmem>>, vector<8x32xf32>,
    } else {
    }
    %c0 = arith.constant 0 : index
    %c0_1 = arith.constant 0 : index
    %c0_2 = arith.constant 0 : index
    %3 = vector.load %arg2[%c0, %c0_1, %c0_2] : memref<1x8x32xf32, #tpu.memory_space<vmem>>, vector<1x8x32xf32>
    %4 = vector.shape_cast %3 : vector<1x8x32xf32> to vector<8x32xf32>
    %c0_3 = arith.constant 0 : index
    %c0_4 = arith.constant 0 : index
    %5 = vector.load %arg5[%c0_3, %c0_4] : memref<32x96xf32, #tpu.memory_space<vmem>>, vector<32x32xf32>
    %cst = arith.constant dense<0.000000e+00> : vector<8x32xf32>
    %6 = tpu.matmul %4, %5, %cst {dimension_numbers = #tpu.dot_dimension_numbers<[1], [0], [0], [1], [0, 0, 1, 1], [], []>} : vector<8x32xf32>, vector<32x32xf32>, vector<8x32xf32> -> vector<8x32xf32>
    %c0_5 = arith.constant 0 : index
    %c0_6 = arith.constant 0 : index
    %7 = vector.load %arg6[%c0_5, %c0_6] : memref<1x96xf32, #tpu.memory_space<vmem>>, vector<1x32xf32>
    %8 = vector.broadcast %7 : vector<1x32xf32> to vector<8x32xf32>
    %9 = arith.addf %6, %8 : vector<8x32xf32>
    %cst_7 = arith.constant 0.353553385 : f32
    %10 = vector.broadcast %cst_7 : f32 to vector<8x32xf32>
    %11 = arith.mulf %9, %10 : vector<8x32xf32>
    %c0_8 = arith.constant 0 : index
    %c0_9 = arith.constant 0 : index
    %12 = vector.load %arg10[%c0_8, %c0_9] : memref<8x64xf32, #tpu.memory_space<vmem>>, vector<8x8xf32>
    %c0_10 = arith.constant 0 : index
    %c32 = arith.constant 32 : index
    %13 = vector.load %arg10[%c0_10, %c32] : memref<8x64xf32, #tpu.memory_space<vmem>>, vector<8x8xf32>
    %14 = vector.extract_strided_slice %11 {offsets = [0, 0], sizes = [8, 8], strides = [1, 1]} : vector<8x32xf32> to vector<8x8xf32>
    %cst_11 = arith.constant dense<0.000000e+00> : vector<8x8xf32>
    %15 = tpu.matmul %14, %12, %cst_11 {dimension_numbers = #tpu.dot_dimension_numbers<[1], [1], [0], [0], [0, 0, 1, 0], [], []>} : vector<8x8xf32>, vector<8x8xf32>, vector<8x8xf32> -> vector<8x8xf32>
    %cst_12 = arith.constant dense<0xFF800000> : vector<8xf32>
    %16 = vector.multi_reduction <maximumf>, %15, %cst_12 [1] : vector<8x8xf32> to vector<8xf32>
    %17 = vector.shape_cast %16 : vector<8xf32> to vector<8x1xf32>
    %18 = vector.broadcast %17 : vector<8x1xf32> to vector<8x8xf32>
    %19 = arith.subf %15, %18 : vector<8x8xf32>
    %20 = math.exp %19 : vector<8x8xf32>
    %cst_13 = arith.constant dense<0.000000e+00> : vector<8xf32>
    %21 = vector.multi_reduction <add>, %20, %cst_13 [1] : vector<8x8xf32> to vector<8xf32>
    %22 = vector.shape_cast %21 : vector<8xf32> to vector<8x1xf32>
    %cst_14 = arith.constant dense<0.000000e+00> : vector<8x8xf32>
    %23 = tpu.matmul %20, %13, %cst_14 {dimension_numbers = #tpu.dot_dimension_numbers<[1], [0], [0], [1], [0, 0, 1, 1], [], []>} : vector<8x8xf32>, vector<8x8xf32>, vector<8x8xf32> -> vector<8x8xf32>
    %24 = tpu.reciprocal %22 {approx = true} : vector<8x1xf32> -> vector<8x1xf32>
    %25 = vector.broadcast %24 : vector<8x1xf32> to vector<8x8xf32>
    %26 = arith.mulf %23, %25 : vector<8x8xf32>
    %c0_15 = arith.constant 0 : index
    %c0_16 = arith.constant 0 : index
    %27 = vector.load %arg11[%c0_15, %c0_16] : memref<8x32xf32, #tpu.memory_space<vmem>>, vector<8x8xf32>
    tpu.vector_store %arg11[%c0_15, %c0_16], %26 {strides = array<i32>} : memref<8x32xf32, #tpu.memory_space<vmem>>, vector<8x8xf32>,
    %c0_17 = arith.constant 0 : index
    %c8 = arith.constant 8 : index
    %28 = vector.load %arg10[%c0_17, %c8] : memref<8x64xf32, #tpu.memory_space<vmem>>, vector<8x8xf32>
    %c0_18 = arith.constant 0 : index
    %c40 = arith.constant 40 : index
    %29 = vector.load %arg10[%c0_18, %c40] : memref<8x64xf32, #tpu.memory_space<vmem>>, vector<8x8xf32>
    %30 = vector.extract_strided_slice %11 {offsets = [0, 8], sizes = [8, 8], strides = [1, 1]} : vector<8x32xf32> to vector<8x8xf32>
    %cst_19 = arith.constant dense<0.000000e+00> : vector<8x8xf32>
    %31 = tpu.matmul %30, %28, %cst_19 {dimension_numbers = #tpu.dot_dimension_numbers<[1], [1], [0], [0], [0, 0, 1, 0], [], []>} : vector<8x8xf32>, vector<8x8xf32>, vector<8x8xf32> -> vector<8x8xf32>
    %cst_20 = arith.constant dense<0xFF800000> : vector<8xf32>
    %32 = vector.multi_reduction <maximumf>, %31, %cst_20 [1] : vector<8x8xf32> to vector<8xf32>
    %33 = vector.shape_cast %32 : vector<8xf32> to vector<8x1xf32>
    %34 = vector.broadcast %33 : vector<8x1xf32> to vector<8x8xf32>
    %35 = arith.subf %31, %34 : vector<8x8xf32>
    %36 = math.exp %35 : vector<8x8xf32>
    %cst_21 = arith.constant dense<0.000000e+00> : vector<8xf32>
    %37 = vector.multi_reduction <add>, %36, %cst_21 [1] : vector<8x8xf32> to vector<8xf32>
    %38 = vector.shape_cast %37 : vector<8xf32> to vector<8x1xf32>
    %cst_22 = arith.constant dense<0.000000e+00> : vector<8x8xf32>
    %39 = tpu.matmul %36, %29, %cst_22 {dimension_numbers = #tpu.dot_dimension_numbers<[1], [0], [0], [1], [0, 0, 1, 1], [], []>} : vector<8x8xf32>, vector<8x8xf32>, vector<8x8xf32> -> vector<8x8xf32>
    %40 = tpu.reciprocal %38 {approx = true} : vector<8x1xf32> -> vector<8x1xf32>
    %41 = vector.broadcast %40 : vector<8x1xf32> to vector<8x8xf32>
    %42 = arith.mulf %39, %41 : vector<8x8xf32>
    %c0_23 = arith.constant 0 : index
    %c8_24 = arith.constant 8 : index
    %43 = vector.load %arg11[%c0_23, %c8_24] : memref<8x32xf32, #tpu.memory_space<vmem>>, vector<8x8xf32>
    tpu.vector_store %arg11[%c0_23, %c8_24], %42 {strides = array<i32>} : memref<8x32xf32, #tpu.memory_space<vmem>>, vector<8x8xf32>,
    %c0_25 = arith.constant 0 : index
    %c16 = arith.constant 16 : index
    %44 = vector.load %arg10[%c0_25, %c16] : memref<8x64xf32, #tpu.memory_space<vmem>>, vector<8x8xf32>
    %c0_26 = arith.constant 0 : index
    %c48 = arith.constant 48 : index
    %45 = vector.load %arg10[%c0_26, %c48] : memref<8x64xf32, #tpu.memory_space<vmem>>, vector<8x8xf32>
    %46 = vector.extract_strided_slice %11 {offsets = [0, 16], sizes = [8, 8], strides = [1, 1]} : vector<8x32xf32> to vector<8x8xf32>
    %cst_27 = arith.constant dense<0.000000e+00> : vector<8x8xf32>
    %47 = tpu.matmul %46, %44, %cst_27 {dimension_numbers = #tpu.dot_dimension_numbers<[1], [1], [0], [0], [0, 0, 1, 0], [], []>} : vector<8x8xf32>, vector<8x8xf32>, vector<8x8xf32> -> vector<8x8xf32>
    %cst_28 = arith.constant dense<0xFF800000> : vector<8xf32>
    %48 = vector.multi_reduction <maximumf>, %47, %cst_28 [1] : vector<8x8xf32> to vector<8xf32>
    %49 = vector.shape_cast %48 : vector<8xf32> to vector<8x1xf32>
    %50 = vector.broadcast %49 : vector<8x1xf32> to vector<8x8xf32>
    %51 = arith.subf %47, %50 : vector<8x8xf32>
    %52 = math.exp %51 : vector<8x8xf32>
    %cst_29 = arith.constant dense<0.000000e+00> : vector<8xf32>
    %53 = vector.multi_reduction <add>, %52, %cst_29 [1] : vector<8x8xf32> to vector<8xf32>
    %54 = vector.shape_cast %53 : vector<8xf32> to vector<8x1xf32>
    %cst_30 = arith.constant dense<0.000000e+00> : vector<8x8xf32>
    %55 = tpu.matmul %52, %45, %cst_30 {dimension_numbers = #tpu.dot_dimension_numbers<[1], [0], [0], [1], [0, 0, 1, 1], [], []>} : vector<8x8xf32>, vector<8x8xf32>, vector<8x8xf32> -> vector<8x8xf32>
    %56 = tpu.reciprocal %54 {approx = true} : vector<8x1xf32> -> vector<8x1xf32>
    %57 = vector.broadcast %56 : vector<8x1xf32> to vector<8x8xf32>
    %58 = arith.mulf %55, %57 : vector<8x8xf32>
    %c0_31 = arith.constant 0 : index
    %c16_32 = arith.constant 16 : index
    %59 = vector.load %arg11[%c0_31, %c16_32] : memref<8x32xf32, #tpu.memory_space<vmem>>, vector<8x8xf32>
    tpu.vector_store %arg11[%c0_31, %c16_32], %58 {strides = array<i32>} : memref<8x32xf32, #tpu.memory_space<vmem>>, vector<8x8xf32>,
    %c0_33 = arith.constant 0 : index
    %c24 = arith.constant 24 : index
    %60 = vector.load %arg10[%c0_33, %c24] : memref<8x64xf32, #tpu.memory_space<vmem>>, vector<8x8xf32>
    %c0_34 = arith.constant 0 : index
    %c56 = arith.constant 56 : index
    %61 = vector.load %arg10[%c0_34, %c56] : memref<8x64xf32, #tpu.memory_space<vmem>>, vector<8x8xf32>
    %62 = vector.extract_strided_slice %11 {offsets = [0, 24], sizes = [8, 8], strides = [1, 1]} : vector<8x32xf32> to vector<8x8xf32>
    %cst_35 = arith.constant dense<0.000000e+00> : vector<8x8xf32>
    %63 = tpu.matmul %62, %60, %cst_35 {dimension_numbers = #tpu.dot_dimension_numbers<[1], [1], [0], [0], [0, 0, 1, 0], [], []>} : vector<8x8xf32>, vector<8x8xf32>, vector<8x8xf32> -> vector<8x8xf32>
    %cst_36 = arith.constant dense<0xFF800000> : vector<8xf32>
    %64 = vector.multi_reduction <maximumf>, %63, %cst_36 [1] : vector<8x8xf32> to vector<8xf32>
    %65 = vector.shape_cast %64 : vector<8xf32> to vector<8x1xf32>
    %66 = vector.broadcast %65 : vector<8x1xf32> to vector<8x8xf32>
    %67 = arith.subf %63, %66 : vector<8x8xf32>
    %68 = math.exp %67 : vector<8x8xf32>
    %cst_37 = arith.constant dense<0.000000e+00> : vector<8xf32>
    %69 = vector.multi_reduction <add>, %68, %cst_37 [1] : vector<8x8xf32> to vector<8xf32>
    %70 = vector.shape_cast %69 : vector<8xf32> to vector<8x1xf32>
    %cst_38 = arith.constant dense<0.000000e+00> : vector<8x8xf32>
    %71 = tpu.matmul %68, %61, %cst_38 {dimension_numbers = #tpu.dot_dimension_numbers<[1], [0], [0], [1], [0, 0, 1, 1], [], []>} : vector<8x8xf32>, vector<8x8xf32>, vector<8x8xf32> -> vector<8x8xf32>
    %72 = tpu.reciprocal %70 {approx = true} : vector<8x1xf32> -> vector<8x1xf32>
    %73 = vector.broadcast %72 : vector<8x1xf32> to vector<8x8xf32>
    %74 = arith.mulf %71, %73 : vector<8x8xf32>
    %c0_39 = arith.constant 0 : index
    %c24_40 = arith.constant 24 : index
    %75 = vector.load %arg11[%c0_39, %c24_40] : memref<8x32xf32, #tpu.memory_space<vmem>>, vector<8x8xf32>
    tpu.vector_store %arg11[%c0_39, %c24_40], %74 {strides = array<i32>} : memref<8x32xf32, #tpu.memory_space<vmem>>, vector<8x8xf32>,
    %c0_41 = arith.constant 0 : index
    %c0_42 = arith.constant 0 : index
    %76 = vector.load %arg11[%c0_41, %c0_42] : memref<8x32xf32, #tpu.memory_space<vmem>>, vector<8x32xf32>
    %c0_43 = arith.constant 0 : index
    %c0_44 = arith.constant 0 : index
    %77 = vector.load %arg7[%c0_43, %c0_44] : memref<32x32xf32, #tpu.memory_space<vmem>>, vector<32x32xf32>
    %cst_45 = arith.constant dense<0.000000e+00> : vector<8x32xf32>
    %78 = tpu.matmul %76, %77, %cst_45 {dimension_numbers = #tpu.dot_dimension_numbers<[1], [0], [0], [1], [0, 0, 1, 1], [], []>} : vector<8x32xf32>, vector<32x32xf32>, vector<8x32xf32> -> vector<8x32xf32>
    %c0_46 = arith.constant 0 : index
    %c0_47 = arith.constant 0 : index
    %79 = vector.load %arg8[%c0_46, %c0_47] : memref<1x32xf32, #tpu.memory_space<vmem>>, vector<1x32xf32>
    %80 = vector.broadcast %79 : vector<1x32xf32> to vector<8x32xf32>
    %81 = arith.addf %78, %80 : vector<8x32xf32>
    %c0_48 = arith.constant 0 : index
    %c0_49 = arith.constant 0 : index
    %c0_50 = arith.constant 0 : index
    %82 = vector.load %arg9[%c0_48, %c0_49, %c0_50] : memref<1x8x32xf32, #tpu.memory_space<vmem>>, vector<1x8x32xf32>
    %83 = vector.shape_cast %82 : vector<1x8x32xf32> to vector<8x32xf32>
    %84 = vector.shape_cast %81 : vector<8x32xf32> to vector<1x8x32xf32>
    tpu.vector_store %arg9[%c0_48, %c0_49, %c0_50], %84 {strides = array<i32>} : memref<1x8x32xf32, #tpu.memory_space<vmem>>, vector<1x8x32xf32>,
    return
  }
  func.func @transform_0(%arg0: i32, %arg1: i32) -> (i32, i32, i32) {
    %c0_i32 = arith.constant 0 : i32
    %c0_i32_0 = arith.constant 0 : i32
    return %arg0, %arg1, %c0_i32 : i32, i32, i32
  }
  func.func @transform_1(%arg0: i32, %arg1: i32) -> (i32, i32, i32) {
    %c0_i32 = arith.constant 0 : i32
    %c0_i32_0 = arith.constant 0 : i32
    %c0_i32_1 = arith.constant 0 : i32
    return %arg0, %c0_i32, %c0_i32_0 : i32, i32, i32
  }
  func.func @transform_2(%arg0: i32, %arg1: i32) -> (i32, i32, i32) {
    %c0_i32 = arith.constant 0 : i32
    %c0_i32_0 = arith.constant 0 : i32
    %c0_i32_1 = arith.constant 0 : i32
    return %arg0, %c0_i32, %c0_i32_0 : i32, i32, i32
  }
  func.func @transform_3(%arg0: i32, %arg1: i32) -> (i32, i32) {
    %c0_i32 = arith.constant 0 : i32
    %c0_i32_0 = arith.constant 0 : i32
    %c0_i32_1 = arith.constant 0 : i32
    return %c0_i32, %c0_i32_0 : i32, i32
  }
  func.func @transform_4(%arg0: i32, %arg1: i32) -> (i32, i32) {
    %c0_i32 = arith.constant 0 : i32
    %c0_i32_0 = arith.constant 0 : i32
    %c0_i32_1 = arith.constant 0 : i32
    return %c0_i32, %c0_i32_0 : i32, i32
  }
  func.func @transform_5(%arg0: i32, %arg1: i32) -> (i32, i32) {
    %c0_i32 = arith.constant 0 : i32
    %c0_i32_0 = arith.constant 0 : i32
    %c0_i32_1 = arith.constant 0 : i32
    return %c0_i32, %c0_i32_0 : i32, i32
  }
  func.func @transform_6(%arg0: i32, %arg1: i32) -> (i32, i32) {
    %c0_i32 = arith.constant 0 : i32
    %c0_i32_0 = arith.constant 0 : i32
    %c0_i32_1 = arith.constant 0 : i32
    return %c0_i32, %c0_i32_0 : i32, i32
  }
  func.func @transform_7(%arg0: i32, %arg1: i32) -> (i32, i32, i32) {
    %c0_i32 = arith.constant 0 : i32
    %c0_i32_0 = arith.constant 0 : i32
    return %arg0, %arg1, %c0_i32 : i32, i32, i32
  }
}

</mosaic_0001>

<bundles_post_ra>
// kernel: tpu_custom_call.1
= control target key start
LH: loop header
LB: loop body
LE: loop exit
PB: predicated region body
PF: predicated region fallthrough
CT: control target
= control target key end

     0   :  { %s1753_s0 = inlined_call_operand.hbm [shape: f32[2,8,32], index: 0, kind: input, shape index: {}]   ;;  %s1754_s1 = inlined_call_operand.hbm [shape: f32[2,8,32], index: 1, kind: input, shape index: {}]   ;;  %s1755_s2 = inlined_call_operand.hbm [shape: f32[2,8,32], index: 2, kind: input, shape index: {}]   ;;  %s1756_s3 = inlined_call_operand.hbm [shape: f32[32,96], index: 3, kind: input, shape index: {}]   ;;  %s1757_s4 = inlined_call_operand.vmem [shape: f32[1,96], index: 4, kind: input, shape index: {}]   ;;  %s1758_s5 = inlined_call_operand.hbm [shape: f32[32,32], index: 5, kind: input, shape index: {}]   ;;  %s1759_s6 = inlined_call_operand.vmem [shape: f32[1,32], index: 6, kind: input, shape index: {}]   ;;  %s1760_s7 = inlined_call_operand.hbm [shape: f32[2,8,32], index: 7, kind: output, shape index: {}]  }
   0x1   :  { %1772 = sst [smem:[#allocation26_spill]] %s1754_s1 }
   0x2   :  { %1773 = sst [smem:[#allocation27_spill]] %s1756_s3 }
   0x3   :  { %1774 = sst [smem:[#allocation28_spill]] %s1758_s5 }
   0x4   :  { %1775 = sst [smem:[#allocation29_spill]] %s1759_s6 }
   0x5   :  { %12 = vsyncpa [#allocation5], 0 }
   0x6   :  { %14 = vsyncpa [#allocation5 + $0x1], 0 }
   0x7   :  { %15 = vsyncpa [#allocation8], 0 }
   0x8   :  { %17 = vsyncpa [#allocation8 + $0x1], 0 }
   0x9   :  { %18 = vsyncpa [#allocation11], 0 }
   0xa   :  { %19 = vsyncpa [#allocation6], 0 }
   0xb   :  { %21 = vsyncpa [#allocation6 + $0x1], 0  ;;  %s1516_s24 = smov 0   ;;  %s1518_s25 = smov 0  }
   0xc   :  { %s1520_s26 = smov 0   ;;  %s1522_s27 = smov 0  }
   0xd   :  { %s1524_s28 = smov 0   ;;  %s1526_s29 = smov 0  }
   0xe LB: > { %1776 = sst [smem:[#allocation18_spill]] %s1438_s24  ;;  %s1547_s30 = sadd.s32 4294967295, %s1458_s29   ;;  %s1458_s29 = sphi %s1526_s29, %s27_s29   ;;  %s1454_s28 = sphi %s1524_s28, %s1805_s28   ;;  %s1450_s27 = sphi %s1522_s27, %s1804_s27   ;;  %s1446_s26 = sphi %s1520_s26, %s1803_s26   ;;  %s1442_s25 = sphi %s1518_s25, %s1807_s25   ;;  %s1438_s24 = sphi %s1516_s24, %s1806_s24  }
   0xf   : > { %1777 = sst [smem:[#allocation19_spill]] %s1446_s26  ;;  %p1035_p0 = scmp.ge.s32.totalorder %s1458_s29, 1 }
  0x10   : > { %1778 = sst [smem:[#allocation20_spill]] %s1454_s28  ;;  %p62_p1 = scmp.eq.s32.totalorder %s1547_s30, 0 }
  0x11   : > { %1779 = sst [smem:[#allocation21_spill]] %s1458_s29  ;;  %p236_p2 = scmp.lt.s32.totalorder %s1458_s29, 3 }
  0x12   : > { %s1780_s3 = sld [smem:[#allocation27_spill]]  ;;  %s1460_s12 = smov [#allocation10]  }
  0x13   : > { %p1555_p3 = pnand %p1035_p0, %p236_p2  ;;  %s249_s13 = sshll.u32 %s1460_s12, 4  ;;  %s250_s13 = int_to_ptr.vmem [resolvable:$true] %s249_s13 }
  0x14   : > { %s1761_s15 = smov 128   ;;  %s1762_s16 = smov 8  }
  0x15   : > { %p1088_p4 = pneg %p1555_p3  ;;  %s1034_s17 = sadd.s32 4294967294, %s1458_s29  }
  0x16   : > { %s39_s18 = sadd.s32 1, %s1454_s28  ;;  %s48_s19 = sadd.s32 1, %s1446_s26 }
  0x17   : > { %p1563_p5 = pnand %p1088_p4, %p62_p1  ;;  %p41_p7 = scmp.ge.s32.totalorder %s39_s18, 2 }
  0x18   : > { %s247_s10 = sshll.u32 %s1780_s3, 4  ;;  %p55_p8 = scmp.ne.s32.totalorder %s1446_s26, %s1442_s25  ;;  %s248_s10 = int_to_ptr.hbm [resolvable:$true] %s247_s10 }
  0x19   : > { %1091 = dma.hbm_to_vmem [thread:$0]  (!%p1563_p5), %s248_s10, 512, %s250_s13, [#allocation11], %s1761_s15, %s1761_s15, %s1762_s16  }
  0x1a   : > { %p56_p9 = scmp.eq.s32.totalorder %s1458_s29, 0  ;;  %p61_p10 = scmp.ne.s32.totalorder %s1442_s25, %s1438_s24 }
  0x1b   : > { %s1809_s18 = smov (%p41_p7, %s39_s18), 0  ;;  %p223_p13 = scmp.eq.s32.totalorder %s1547_s30, 1 }
  0x1c   : > { %1783 = sst [smem:[#allocation22_spill]] %s1809_s18  ;;  %p1583_p11 = por %p56_p9, %p55_p8 }
  0x1d   : > { %p1589_p12 = por %p62_p1, %p61_p10  ;;  %s43_s22 = ssub.s32 %s1454_s28, %s1809_s18 }
  0x1e   : > { %p46_p0 = scmp.eq.s32.totalorder %s43_s22, 0  ;;  %p229_p2 = scmp.eq.s32.totalorder %s1034_s17, 1 }
  0x1f   : > { %p1596_p4 = por %p223_p13, %p55_p8  ;;  %p1111_p7 = scmp.lt.s32.totalorder %s1458_s29, 2 }
  0x20   : > { %s1602_s8 = scalar_select %p46_p0, %s1446_s26, %s48_s19  }
  0x21   : > { %s1786_s23 = scalar_select %p1596_p4, 1, 0 }
  0x22   : > { %1788 = sst [smem:[#allocation24_spill]] %s1602_s8  ;;  %p1604_p9 = por %p229_p2, %p61_p10 }
  0x23   : > { %1787 = sst [smem:[#allocation23_spill]] %s1786_s23  ;;  %s283_s10 = sand.u32 1, %s1446_s26  }
  0x24   : > { %s1789_s9 = scalar_select %p1604_p9, 1, 0 }
  0x25   : > { %s1609_s12 = sshll.u32 %s283_s10, 3  ;;  %s1040_s13 = sshll.u32 %s1454_s28, 3 }
  0x26   : > { %1790 = sst [smem:[#allocation25_spill]] %s1789_s9  ;;  %p1614_p6 = pnand %p1111_p7, %p1583_p11 }
  0x27   : > { %s303_s22 = sand.u32 1, %s1458_s29   ;;  %s1792_s1 = sld [smem:[#allocation26_spill]] }
  0x28   : > { %s307_s18 = scalar_lea.vmem [#allocation7], %s1609_s12  ;;  %s304_s28 = scalar_lea.sflag [#allocation8], %s303_s22 }
  0x29   : > { %s315_s8 = sshll.u32 %s307_s18, 4  ;;  %s1793_s5 = sld [smem:[#allocation28_spill]]  ;;  %s316_s8 = int_to_ptr.vmem [resolvable:$true] %s315_s8 }
  0x2a   : > { %s1463_s29 = smov [#allocation12]   ;;  %s1794_s15 = smov 8  }
  0x2b   : > { %s266_s24 = sshll.u32 %s1463_s29, 4  ;;  %s292_s22 = scalar_lea.hbm %s1753_s0, %s1040_s13  ;;  %s267_s24 = int_to_ptr.vmem [resolvable:$true] %s266_s24 }
  0x2c   : > { %s284_s26 = scalar_lea.sflag [#allocation5], %s283_s10  ;;  %s330_s14 = scalar_lea.hbm %s1755_s2, %s1040_s13 }
  0x2d   : > { %s311_s16 = scalar_lea.hbm %s1792_s1, %s1040_s13  ;;  %s326_s6 = scalar_lea.vmem [#allocation9], %s1609_s12 }
  0x2e   : > { %s313_s3 = sshll.u32 %s311_s16, 4  ;;  %s1795_s16 = smov 128   ;;  %s314_s3 = int_to_ptr.hbm [resolvable:$true] %s313_s3 }
  0x2f   : > { %1101 = dma.hbm_to_vmem [thread:$0]  (!%p1614_p6), %s314_s3, 128, %s316_s8, %s304_s28  }
  0x30   : > { %s264_s9 = sshll.u32 %s1793_s5, 4  ;;  %s294_s3 = sshll.u32 %s292_s22, 4  ;;  %s265_s9 = int_to_ptr.hbm [resolvable:$true] %s264_s9  ;;  %s295_s3 = int_to_ptr.hbm [resolvable:$true] %s294_s3 }
  0x31   : > { %1094 = dma.hbm_to_vmem [thread:$0]  (!%p1563_p5), %s265_s9, 512, %s267_s24, [#allocation11], %s1795_s16, %s1795_s16, %s1794_s15  }
  0x32   : > { %s287_s8 = scalar_lea.vmem [#allocation4], %s1609_s12  ;;  %s332_s5 = sshll.u32 %s330_s14, 4  ;;  %s333_s5 = int_to_ptr.hbm [resolvable:$true] %s332_s5 }
  0x33   : > { %s296_s1 = sshll.u32 %s287_s8, 4  ;;  %s334_s23 = sshll.u32 %s326_s6, 4  ;;  %s297_s1 = int_to_ptr.vmem [resolvable:$true] %s296_s1  ;;  %s335_s23 = int_to_ptr.vmem [resolvable:$true] %s334_s23 }
  0x34   : > { %1098 = dma.hbm_to_vmem [thread:$0]  (!%p1614_p6), %s295_s3, 128, %s297_s1, %s284_s26  }
  0x35   : > { %1104 = dma.hbm_to_vmem [thread:$0]  (!%p1614_p6), %s333_s5, 128, %s335_s23, %s304_s28  }
  0x36   : > { %343 = sbr.rel (%p1555_p3) target bundleno = 1241 (0x4d9), region = 48  ;;  %s1648_s24 = sand.u32 (!%p1555_p3), 1, %s1442_s25  }
  0x37   : > { %s1651_s1 = sshll.u32 (!%p1555_p3), %s1648_s24, 3  ;;  %s346_s9 = scalar_lea.sflag (!%p1555_p3), [#allocation5], %s1648_s24 }
  0x38   : > { %s349_s10 = scalar_lea.vmem (!%p1555_p3), [#allocation4], %s1651_s1 }
  0x3b   : > { %1421 = dma.done.wait (%p1589_p12), %s346_s9, 128  }
  0x3c   : > { %1423 = vsyncadd (%p1589_p12), %s346_s9, 4294967168  ;;  %s355_s5 = sand.u32 1, %s1547_s30   ;;  %s359_s28 = scalar_lea.vmem [#allocation7], %s1651_s1 }
  0x3d   : > { %s356_s6 = scalar_lea.sflag [#allocation8], %s355_s5 }
  0x3e   : > { %1425 = dma.done.wait (%p1589_p12), %s356_s6, 256  }
  0x3f   : > { %1427 = vsyncadd (%p1589_p12), %s356_s6, 4294967040  ;;  %s369_s11 = scalar_lea.vmem [#allocation9], %s1651_s1 }
  0x40   : > { %1429 = dma.done.wait (%p62_p1), [#allocation11], 1024  }
  0x41   : > { %1431 = vsyncadd (%p62_p1), [#allocation11], 4294966272  ;;  %v427_v0 = vld [vmem:[#allocation10 + $0x10] sm:$0xff]  ;;  %v428_v1 = vld [vmem:[#allocation10 + $0x18] sm:$0xff]  ;;  %s1464_s23 = smov 64   ;;  %s1465_s12 = smov 96  }
  0x42   : > { %v1179_v2 = vpack.i.bf16 %v427_v0, %v428_v1  ;;  %547 = vmatpush.msra.mxu2 %v428_v1  ;;  %v425_v3 = vld [vmem:[#allocation10] sm:$0xff]  ;;  %v426_v4 = vld [vmem:[#allocation10 + $0x8] sm:$0xff]  ;;  %vm452_vm0 = vcmask 261120   ;;  %v522_v7 = vld [vmem:[%s349_s10] sm:$0xff]  ;;  %s1466_s15 = smov 112   ;;  %s1467_s16 = smov 32  }
  0x43   : > { %v1184_v5 = vpack.i.bf16 %v425_v3, %v426_v4  ;;  %v1199_v6 = vld [vmem:[%s1757_s4] ss:$0 sm:$0xff]  ;;  %v476_v20 = vld [vmem:[%s369_s11] sm:$0xff]  ;;  %vm520_vm1 = vcmask 523520   ;;  %vm557_vm2 = vcmask 64512   ;;  %s1468_s18 = smov 104  }
  0x44   : > { %1180 = vrot.lane.b32.xlu0 %v1179_v2, %s1464_s23  ;;  %1190 = vrot.lane.b32.xlu1 %v1179_v2, %s1465_s12  ;;  %v429_v21 = vld [vmem:[%s359_s28] sm:$0xff]  ;;  %s1469_s19 = smov 120   ;;  %s1470_s22 = smov 88   ;;  %vm693_vm3 = vcmask 130112   ;;  %vm766_vm4 = vcmask 195712   ;;  %vm839_vm5 = vcmask 261312  }
  0x45   : > { %548 = vmatpush.msra.mxu2 %v427_v0  ;;  %489 = vrot.lane.b32.xlu2 %v1199_v6, %s1464_s23  ;;  %v1200_v22 = vld [vmem:[%s1757_s4] ss:$0 sm:$0xff]  ;;  %s1471_s3 = smov 72   ;;  %s1472_s8 = smov 80  }
  0x46   : > { %s1473_s26 = smov 8   ;;  %s1474_s29 = smov 24  }
  0x47   : > { %549 = vmatpush.msra.mxu2 %v426_v4  ;;  %s1475_s20 = smov 16   ;;  %s1069_s14 = sshll.u32 %s1450_s27, 3 }
  0x48   : > { %s886_s6 = scalar_lea.hbm %s1760_s7, %s1069_s14  ;;  %s875_s13 = scalar_lea.sflag [#allocation6], %s1648_s24 }
  0x49   : > { %550 = vmatpush.msra.mxu2 %v425_v3  ;;  %s890_s21 = sshll.u32 %s886_s6, 4  ;;  %s891_s21 = int_to_ptr.hbm [resolvable:$true] %s890_s21 }
  0x4a   : > { %1054 = vmatmul.msk.f32.vlgmr.msra.gmra.mxu2 %vm452_vm0, %v522_v7  ;;  %s1382_s27 = sshra.s32 %s891_s21, 4  ;;  %s1383_s27 = int_to_ptr.hbm [resolvable:$true] %s1382_s27 }
  0x4b   : > { %s1384_s17 = scalar_lea.hbm %s1383_s27, 8  ;;  %p1389_p6 = scmp.lt.s32.totalorder %s1383_s27, %s1760_s7 }
  0x4c   : > { %1185 = vrot.lane.b32.xlu0 %v1184_v5, %s1464_s23  ;;  %1195 = vrot.lane.b32.xlu1 %v1184_v5, %s1465_s12  ;;  %s1797_s23 = sld [smem:[#allocation29_spill]]  ;;  %p1385_p1 = scmp.ne.s32.totalorder %s1383_s27, %s1384_s17 }
  0x4d   : > { %449 = vrot.lane.b32.xlu2 %v1199_v6, %s1465_s12 }
  0x4e   : > { %p1386_p3 = pnand %p1385_p1, %p1596_p4 }
  0x50   : > { %p1387_p5 = pneg %p1386_p3 }
  0x9f   : > { %v490_v26 = vpop.permute.xlu2 %489 }
  0xa7   : > { %v450_v27 = vpop.permute.xlu2 %449 }
  0xb6   : > { %v1181_v8 = vpop.permute.xlu0 %1180  ;;  %v1191_v9 = vpop.permute.xlu1 %1190 }
  0xb7   : > { %v1182_v10 = vunpack.i.l.bf16 %v1181_v8  ;;  %v1192_v11 = vunpack.i.l.bf16 %v1191_v9  ;;  %v1193_v12 = vunpack.i.h.bf16 %v1191_v9  ;;  %v1183_v13 = vunpack.i.h.bf16 %v1181_v8 }
  0xb9   : > { %507 = vmatpush.msra.mxu1 %v1182_v10  ;;  %468 = vmatpush.msra.mxu0 %v1192_v11 }
  0xbb   : > { %508 = vmatpush.msra.mxu1 %v1183_v13  ;;  %469 = vmatpush.msra.mxu0 %v1193_v12 }
  0xbe   : > { %v1186_v14 = vpop.permute.xlu0 %1185  ;;  %v1196_v15 = vpop.permute.xlu1 %1195 }
  0xbf   : > { %v1187_v16 = vunpack.i.l.bf16 %v1186_v14  ;;  %v1197_v17 = vunpack.i.l.bf16 %v1196_v15  ;;  %v1198_v18 = vunpack.i.h.bf16 %v1196_v15  ;;  %v1188_v19 = vunpack.i.h.bf16 %v1186_v14 }
  0xc1   : > { %509 = vmatpush.msra.mxu1 %v1187_v16  ;;  %470 = vmatpush.msra.mxu0 %v1197_v17 }
  0xc3   : > { %510 = vmatpush.msra.mxu1 %v1188_v19  ;;  %471 = vmatpush.msra.mxu0 %v1198_v18 }
  0xc4   : > { %1053 = vmatmul.msk.f32.vlgmr.msra.gmra.mxu1 %vm452_vm0, %v476_v20  ;;  %1052 = vmatmul.msk.f32.vlgmr.msra.gmra.mxu0 %vm452_vm0, %v429_v21 }
  0xcd   : > { %v552_v23 = vpop.f32.mrf.mxu2 }
  0xce   : > { %v553_v24 = vadd.f32 %v1200_v22, %v552_v23 }
  0xd0   : > { %v555_v25 = vmul.f32 0.35355338, %v553_v24 }
  0xd2   : > { %696 = vrot.lane.b32.xlu2 %v555_v25, %s1466_s15 }
 0x12c   : > { %v697_v34 = vpop.permute.xlu2 %696 }
 0x141   : > { %v512_v28 = vpop.f32.mrf.mxu1  ;;  %v473_v29 = vpop.f32.mrf.mxu0 }
 0x142   : > { %v513_v30 = vadd.f32 %v512_v28, %v490_v26  ;;  %v474_v31 = vadd.f32 %v473_v29, %v450_v27  ;;  %v844_v26 = vld [vmem:[#allocation12 + $0x10] sm:$0xff]  ;;  %v843_v27 = vld [vmem:[#allocation12 + $0x8] sm:$0xff]  ;;  %v842_v28 = vld [vmem:[#allocation12] sm:$0xff] }
 0x144   : > { %517 = vrot.lane.b32.xlu0 %v513_v30, %s1467_s16  ;;  %515 = vst.msk [vmem:[#allocation2] sm:$0xff] %vm452_vm0, %v474_v31 }
 0x1b6   : > { %v518_v32 = vpop.permute.xlu0 %517 }
 0x1b7   : > { %521 = vst.msk [vmem:[#allocation2] sm:$0xff] %vm520_vm1, %v518_v32  ;;  %v1201_v32 = vld [vmem:[%s1797_s23] ss:$0 sm:$0xff] }
 0x1be   : > { %v768_v33 = vld [vmem:[#allocation2] sm:$0xff] }
 0x1bf   : > { %772 = vrot.lane.b32.xlu2 %v768_v33, %s1468_s18  ;;  %699 = vrot.lane.b32.xlu1 %v768_v33, %s1466_s15 }
 0x1c0   : > { %626 = vrot.lane.b32.xlu0 %v768_v33, %s1469_s19  ;;  %1055 = vmatpush.xpose.msk.msra.mxu3 %vm557_vm2, %v768_v33 }
 0x1c3   : > { %1056 = vmatmul.msk.f32.vlgmr.msra.gmra.mxu3 %vm557_vm2, %v555_v25 }
 0x1c7   : > { %623 = vrot.lane.b32.xlu1 %v555_v25, %s1469_s19  ;;  %593 = vrot.lane.b32.xlu2 %v768_v33, %s1465_s12  ;;  %s420_s12 = scalar_lea.vmem [#allocation13], %s1651_s1  ;;  %s1388_s1 = scalar_lea.hbm %s1760_s7, 16 }
 0x1c8   : > { %769 = vrot.lane.b32.xlu0 %v555_v25, %s1468_s18  ;;  %v845_v25 = vld [vmem:[#allocation12 + $0x18] sm:$0xff]  ;;  %s888_s30 = sshll.u32 %s420_s12, 4  ;;  %p1390_p8 = scmp.lt.s32.totalorder %s1388_s1, %s1384_s17  ;;  %s889_s30 = int_to_ptr.vmem [resolvable:$true] %s888_s30 }
 0x1ca   : > { %p1391_p10 = por %p1390_p8, %p1389_p6 }
 0x1cc   : > { %p1392_p11 = pnand %p1391_p10, %p1387_p5 }
 0x219   : > { %v773_v35 = vpop.permute.xlu2 %772 }
 0x221   : > { %v594_v36 = vpop.permute.xlu2 %593 }
 0x222   : > { %614 = vmatpush.msrb.mxu3 %v594_v36 }
 0x231   : > { %v700_v37 = vpop.permute.xlu1 %699 }
 0x232   : > { %v627_v38 = vpop.permute.xlu0 %626  ;;  %1061 = vmatpush.xpose.msk.msrb.mxu2 %vm557_vm2, %v700_v37 }
 0x233   : > { %1058 = vmatpush.xpose.msk.msrb.mxu0 %vm557_vm2, %v627_v38 }
 0x235   : > { %1062 = vmatmul.msk.f32.vlgmr.msrb.gmra.mxu2 %vm557_vm2, %v697_v34 }
 0x236   : > { %865 = vmatpush.msra.mxu2 %v845_v25 }
 0x237   : > { %1064 = vmatpush.xpose.msk.msra.mxu0 %vm557_vm2, %v773_v35 }
 0x238   : > { %866 = vmatpush.msra.mxu2 %v844_v26 }
 0x239   : > { %v624_v39 = vpop.permute.xlu1 %623 }
 0x23a   : > { %1059 = vmatmul.msk.f32.vlgmr.msrb.gmra.mxu0 %vm557_vm2, %v624_v39  ;;  %v770_v40 = vpop.permute.xlu0 %769  ;;  %867 = vmatpush.msra.mxu2 %v843_v27 }
 0x23c   : > { %868 = vmatpush.msra.mxu2 %v842_v28 }
 0x242   : > { %1065 = vmatmul.msk.f32.vlgmr.msra.gmra.mxu0 %vm557_vm2, %v770_v40 }
 0x246   : > { %v581_v41 = vpop.f32.mrf.mxu3 }
 0x247   : > { %v584_v42 = vsel %vm557_vm2, %v581_v41, -inf }
 0x248   : > { %585 = vmax.xlane.f32.xlu1 %v584_v42 }
 0x2b7   : > { %v649_v43 = vpop.f32.mrf.mxu0 }
 0x2b8   : > { %v722_v44 = vpop.f32.mrf.mxu2  ;;  %v652_v45 = vsel %vm557_vm2, %v649_v43, -inf }
 0x2b9   : > { %653 = vmax.xlane.f32.xlu2 %v652_v45  ;;  %v725_v46 = vsel %vm557_vm2, %v722_v44, -inf }
 0x2ba   : > { %726 = vmax.xlane.f32.xlu0 %v725_v46 }
 0x2bb   : > { %v586_v47 = vpop.xlane.xlu1 %585 }
 0x2bc   : > { %v587_v48 = vsub.f32 %v581_v41, %v586_v47 }
 0x2be   : > { %v588_v49 = vmul.f32 1.442695, %v587_v48 }
 0x2bf   : > { %v795_v50 = vpop.f32.mrf.mxu0 }
 0x2c0   : > { %1202 = vpow2.f32 %v588_v49  ;;  %v798_v51 = vsel %vm557_vm2, %v795_v50, -inf }
 0x2c1   : > { %799 = vmax.xlane.f32.xlu1 %v798_v51 }
 0x2c6   : > { %v1203_v52 = vpop.eup %1202 }
 0x2c7   : > { %1057 = vmatmul.msk.f32.vlgmr.msrb.gmra.mxu3 %vm557_vm2, %v1203_v52  ;;  %v590_v4 = vsel %vm557_vm2, %v1203_v52, 0.0 }
 0x2ce   : > { %661 = vrot.lane.b32.xlu0 %v768_v33, %s1470_s22 }
 0x2d1   : > { %807 = vrot.lane.b32.xlu2 %v768_v33, %s1471_s3 }
 0x2da   : > { %734 = vrot.lane.b32.xlu1 %v768_v33, %s1472_s8 }
 0x32c   : > { %v654_v53 = vpop.xlane.xlu2 %653 }
 0x32d   : > { %v655_v54 = vsub.f32 %v649_v43, %v654_v53  ;;  %v727_v55 = vpop.xlane.xlu0 %726 }
 0x32e   : > { %v728_v56 = vsub.f32 %v722_v44, %v727_v55 }
 0x32f   : > { %v656_v57 = vmul.f32 1.442695, %v655_v54 }
 0x330   : > { %v729_v58 = vmul.f32 1.442695, %v728_v56 }
 0x331   : > { %1204 = vpow2.f32 %v656_v57 }
 0x332   : > { %1206 = vpow2.f32 %v729_v58 }
 0x334   : > { %v800_v59 = vpop.xlane.xlu1 %799  ;;  %v808_v6 = vpop.permute.xlu2 %807 }
 0x335   : > { %v801_v60 = vsub.f32 %v795_v50, %v800_v59 }
 0x337   : > { %v1205_v61 = vpop.eup %1204  ;;  %v802_v62 = vmul.f32 1.442695, %v801_v60 }
 0x338   : > { %v1207_v63 = vpop.eup %1206  ;;  %v658_v0 = vsel %vm557_vm2, %v1205_v61, 0.0 }
 0x339   : > { %1208 = vpow2.f32 %v802_v62  ;;  %659 = vadd.xlane.f32.xlu0 %v658_v0  ;;  %v731_v1 = vsel %vm557_vm2, %v1207_v63, 0.0 }
 0x33a   : > { %732 = vadd.xlane.f32.xlu2 %v731_v1 }
 0x33f   : > { %v1209_v2 = vpop.eup %1208 }
 0x340   : > { %v662_v3 = vpop.permute.xlu0 %661  ;;  %v804_v5 = vsel %vm557_vm2, %v1209_v2, 0.0 }
 0x341   : > { %682 = vmatpush.msrb.mxu1 %v662_v3  ;;  %591 = vadd.xlane.f32.xlu0 %v590_v4 }
 0x342   : > { %805 = vadd.xlane.f32.xlu1 %v804_v5  ;;  %1060 = vmatmul.msk.f32.vlgmr.msrb.gmra.mxu1 %vm557_vm2, %v1205_v61 }
 0x343   : > { %828 = vmatpush.msra.mxu1 %v808_v6 }
 0x34a   : > { %1066 = vmatmul.msk.f32.vlgmr.msra.gmra.mxu1 %vm557_vm2, %v1209_v2  ;;  %v616_v11 = vpop.f32.mrf.mxu3 }
 0x34c   : > { %v735_v7 = vpop.permute.xlu1 %734 }
 0x34d   : > { %755 = vmatpush.msra.mxu3 %v735_v7 }
 0x34e   : > { %1063 = vmatmul.msk.f32.vlgmr.msra.gmra.mxu3 %vm557_vm2, %v1207_v63 }
 0x3ac   : > { %v660_v8 = vpop.xlane.xlu0 %659 }
 0x3ad   : > { %v733_v19 = vpop.xlane.xlu2 %732 }
 0x3b4   : > { %v592_v9 = vpop.xlane.xlu0 %591 }
 0x3b5   : > { %1210 = vrcp.f32 %v592_v9  ;;  %v806_v13 = vpop.xlane.xlu1 %805 }
 0x3b6   : > { %1212 = vrcp.f32 %v660_v8 }
 0x3b7   : > { %1214 = vrcp.f32 %v806_v13 }
 0x3b8   : > { %1216 = vrcp.f32 %v733_v19 }
 0x3bb   : > { %v1211_v10 = vpop.eup %1210 }
 0x3bc   : > { %v620_v12 = vmul.f32 %v1211_v10, %v616_v11  ;;  %v1213_v14 = vpop.eup %1212 }
 0x3bd   : > { %v1215_v17 = vpop.eup %1214 }
 0x3be   : > { %621 = vst.msk [vmem:[#allocation3] sm:$0xff] %vm557_vm2, %v620_v12  ;;  %v1217_v21 = vpop.eup %1216 }
 0x3bf   : > { %v684_v15 = vpop.f32.mrf.mxu1 }
 0x3c0   : > { %v688_v16 = vmul.f32 %v1213_v14, %v684_v15 }
 0x3c2   : > { %690 = vrot.lane.b32.xlu2 %v688_v16, %s1473_s26 }
 0x3c7   : > { %v830_v18 = vpop.f32.mrf.mxu1 }
 0x3c8   : > { %v834_v20 = vmul.f32 %v1215_v17, %v830_v18 }
 0x3ca   : > { %836 = vrot.lane.b32.xlu0 %v834_v20, %s1474_s29 }
 0x3d1   : > { %v757_v22 = vpop.f32.mrf.mxu3 }
 0x3d2   : > { %v761_v23 = vmul.f32 %v1217_v21, %v757_v22 }
 0x3d4   : > { %763 = vrot.lane.b32.xlu1 %v761_v23, %s1475_s20 }
 0x41c   : > { %v691_v24 = vpop.permute.xlu2 %690 }
 0x41d   : > { %694 = vst.msk [vmem:[#allocation3] sm:$0xff] %vm693_vm3, %v691_v24 }
 0x43c   : > { %v837_v30 = vpop.permute.xlu0 %836 }
 0x446   : > { %v764_v29 = vpop.permute.xlu1 %763 }
 0x447   : > { %767 = vst.msk [vmem:[#allocation3] sm:$0xff] %vm766_vm4, %v764_v29 }
 0x448   : > { %840 = vst.msk [vmem:[#allocation3] sm:$0xff] %vm839_vm5, %v837_v30 }
 0x44f   : > { %v841_v31 = vld [vmem:[#allocation3] sm:$0xff] }
 0x450   : > { %1067 = vmatmul.msk.f32.vlgmr.msra.gmra.mxu2 %vm452_vm0, %v841_v31 }
 0x4d3   : > { %v870_v33 = vpop.f32.mrf.mxu2 }
 0x4d4   : > { %v871_v34 = vadd.f32 %v1201_v32, %v870_v33 }
 0x4d6   : > { %873 = vst.msk [vmem:[%s420_s12] sm:$0xff] %vm452_vm0, %v871_v34 }
 0x4d7   : > { %1395 = shalt.err (!%p1392_p11)
}
 0x4d8   : > { %1086 = dma.vmem_to_hbm [thread:$0]  (%p1596_p4), %s889_s30, 128, %s891_s21, %s875_s13  }
 0x4d9 PF: > { %s1798_s24 = sld [smem:[#allocation18_spill]] }
 0x4da   : > { %s1800_s3 = sld [smem:[#allocation21_spill]] }
 0x4df   : > { %s902_s8 = sand.u32 1, %s1798_s24  }
 0x4e0   : > { %p1801_p12 = scmp.ge.s32.totalorder %s1800_s3, 2  ;;  %s903_s26 = scalar_lea.sflag [#allocation6], %s902_s8 }
 0x4e2   : > { %p1106_p13 = pnand %p1801_p12, %p1604_p9 }
 0x4e4   : > { %p1107_p0 = pneg %p1106_p13 }
 0x4e6   : > { %1433 = dma.done.wait (%p1107_p0), %s903_s26, 128  }
 0x4e7   : > { %1435 = vsyncadd (%p1107_p0), %s903_s26, 4294967168  ;;  %s27_s29 = sadd.s32 1, %s1800_s3   ;;  %s1802_s20 = sld [smem:[#allocation19_spill]] }
 0x4e8   : > { %p24_p2 = scmp.ge.s32.totalorder %s27_s29, 4   ;;  %s1803_s26 = sld [smem:[#allocation24_spill]] }
 0x4e9   : > { %s1804_s27 = sld [smem:[#allocation20_spill]]  ;;  %s1806_s24 = smov %s1442_s25 }
 0x4ea   : > { %s1805_s28 = sld [smem:[#allocation22_spill]]  ;;  %26 = sbr.rel (!%p24_p2) target bundleno = 14 (0xe), region = 129 }
 0x4ed   : > { %s1807_s25 = smov %s1802_s20 }
 0x4ef   :  { %909 = vsyncpa [#allocation5], 1 }
 0x4f0   :  { %911 = vsyncpa [#allocation5 + $0x1], 1 }
 0x4f1   :  { %912 = vsyncpa [#allocation8], 1 }
 0x4f2   :  { %914 = vsyncpa [#allocation8 + $0x1], 1 }
 0x4f3   :  { %915 = vsyncpa [#allocation11], 1 }
 0x4f4   :  { %916 = vsyncpa [#allocation6], 1 }
 0x4f5   :  { %918 = vsyncpa [#allocation6 + $0x1], 1 }

</bundles_post_ra>
